<compile_context>
chip_gen: v7x
topology: tpu7x:2x2x1
jax: 0.10.0
libtpu: 0.0.40
codegen_flags: <defaults>
</compile_context>

<pallas_src>
import functools

import jax
import jax.numpy as jnp
from jax.experimental import pallas as pl
from jax.experimental.pallas import tpu as pltpu


def _lstm_seq_kernel(x_ref, wih_ref, wcomb_ref, whr_ref, b_ref,
                     out_ref, hn_ref, cn_ref,
                     *, seq_len, batch, hidden_size, proj_size, n_last):
    """Whole projected-LSTM sequence in one kernel invocation (time fully unrolled)."""
    T, B, H, P = seq_len, batch, hidden_size, proj_size
    four_h = 4 * H

    # ---- Phase 1: hoisted input projection (off the serial a/c chain) ----
    # One (B*T, D) @ (D, 4H) MXU matmul + a single sublane-broadcast bias add.
    gx = (jnp.dot(x_ref[...], wih_ref[...], preferred_element_type=jnp.float32)
          + b_ref[...])                                      # (B*T, 4H), batch-major rows

    wcomb = wcomb_ref[...]                                   # (H, 4H) = whr^T @ whh^T (folded)
    whr = whr_ref[...]                                       # (H, P)

    # ---- Phase 1b: assemble per-step gate-x blocks, batch on sublanes ----
    # Row b of step t is gx[b*T + t].  This is state-independent, so the LLO scheduler is
    # free to hoist/overlap it with the recurrence (it never sits on the critical path).
    row_id = jax.lax.broadcasted_iota(jnp.int32, (B, four_h), 0)
    gx_steps = []
    for t in range(T):
        blk = jnp.broadcast_to(gx[t:t + 1, :], (B, four_h))          # row for b = 0
        for b in range(1, B):   # TODO(synk): for B >= 8, build this via a padded time-major gx
            row = gx[b * T + t:b * T + t + 1, :]                     # (1, 4H)
            blk = jnp.where(row_id == b, jnp.broadcast_to(row, (B, four_h)), blk)
        gx_steps.append(blk)                                         # (B, 4H)

    # ---- Phase 2: recurrence, fully unrolled (T small & static); a/c live in vregs ----
    a = jnp.zeros((B, H), jnp.float32)     # a_t = o_t * tanh(c_t);  h_t = a_t @ whr
    c = jnp.zeros((B, H), jnp.float32)
    h = None
    for t in range(T):
        # Single MXU round trip per step on the critical path (projection folded into wcomb).
        gates = gx_steps[t] + jnp.dot(a, wcomb, preferred_element_type=jnp.float32)  # (B, 4H)

        # PyTorch gate order [i, f, g, o]; two full-width EUP passes instead of four.
        sig = jax.nn.sigmoid(gates)
        th = jnp.tanh(gates)
        i_g = sig[:, 0 * H:1 * H]
        f_g = sig[:, 1 * H:2 * H]
        g_g = th[:, 2 * H:3 * H]
        o_g = sig[:, 3 * H:4 * H]

        c = f_g * c + i_g * g_g                                       # (B, H)
        a = o_g * jnp.tanh(c)                                         # (B, H) pre-projection

        if t >= T - n_last:              # only emitted steps get projected (off-chain)
            h = jnp.dot(a, whr, preferred_element_type=jnp.float32)   # (B, P)
            idx = t - (T - n_last)
            out_ref[:, idx * P:(idx + 1) * P] = h                     # batch-first lane slice

    hn_ref[...] = h                      # h from t = T-1 (n_last >= 1 guarantees it exists)
    cn_ref[...] = c


@functools.partial(jax.jit, static_argnames=("n_last",))
def lstm_proj_forward(x_btd, wih_t, wcomb, whr_t, bias, n_last=1):
    """Projected LSTM over a batch-first sequence.

    Args:
      x_btd: [B, T, D] float32
      wih_t: [D, 4H], wcomb: [H, 4H] (= whr_t @ whh_t), whr_t: [H, P], bias: [1, 4H]
      n_last: number of trailing timesteps to emit (== module's n_targets)
    Returns:
      output_last [B, n_last, P], h_n [1, B, P], c_n [1, B, H]
    """
    B, T, D = x_btd.shape
    four_h = wih_t.shape[1]
    H = four_h // 4
    P = whr_t.shape[1]
    n_last = max(1, min(int(n_last), T))

    x_flat = x_btd.reshape(B * T, D)     # free, layout-preserving (no transpose dispatched)

    kernel = functools.partial(_lstm_seq_kernel, seq_len=T, batch=B,
                               hidden_size=H, proj_size=P, n_last=n_last)

    vmem = pl.BlockSpec(memory_space=pltpu.MemorySpace.VMEM)
    out_flat, h_n, c_n = pl.pallas_call(
        kernel,
        out_shape=(
            jax.ShapeDtypeStruct((B, n_last * P), jnp.float32),   # last n steps, batch-first
            jax.ShapeDtypeStruct((B, P), jnp.float32),            # final h
            jax.ShapeDtypeStruct((B, H), jnp.float32),            # final c
        ),
        in_specs=[vmem] * 5,
        out_specs=(vmem, vmem, vmem),
        # Single invocation: no grid — the whole problem is a few KiB resident in VMEM.
    )(x_flat, wih_t, wcomb, whr_t, bias)

    # Only free reshapes below (kernel already emits batch-first / final-state layouts).
    return out_flat.reshape(B, n_last, P), h_n[None, ...], c_n[None, ...]


class BaselineLSTMPallas:
    """Mirrors BaselineLSTM(input_size, hidden_size, n_targets=1, output_size=None,
    use_embeddings=False). Embedding path is Identity (the default)."""

    def __init__(self, input_size, hidden_size, n_targets=1, output_size=None, key=None):
        self.input_size = input_size
        self.hidden_size = hidden_size
        self.output_size = output_size if output_size is not None else input_size  # proj_size
        # NOTE: intentionally mirrors the PyTorch module (emits one extra step if n_targets>1).
        self.n_targets = n_targets + (1 if n_targets > 1 else 0)

        H, D, P = hidden_size, self.input_size, self.output_size
        key = jax.random.PRNGKey(42) if key is None else key
        k = 1.0 / jnp.sqrt(jnp.float32(H))
        ks = jax.random.split(key, 5)
        # PyTorch nn.LSTM parameter shapes (proj_size=P): uniform(-1/sqrt(H), 1/sqrt(H))
        w_ih = jax.random.uniform(ks[0], (4 * H, D), jnp.float32, -k, k)
        w_hh = jax.random.uniform(ks[1], (4 * H, P), jnp.float32, -k, k)
        b_ih = jax.random.uniform(ks[2], (4 * H,), jnp.float32, -k, k)
        b_hh = jax.random.uniform(ks[3], (4 * H,), jnp.float32, -k, k)
        w_hr = jax.random.uniform(ks[4], (P, H), jnp.float32, -k, k)

        # pre-transposed "x @ W" form for the kernel
        self.wih_t = jnp.asarray(w_ih.T)              # [D, 4H]
        self.whh_t = jnp.asarray(w_hh.T)              # [P, 4H]  (kept for the reference check)
        self.whr_t = jnp.asarray(w_hr.T)              # [H, P]
        self.bias = (b_ih + b_hh)[None, :]            # [1, 4H]
        # Projection folded into the recurrent weight (one-time): gates += a @ (whr^T @ whh^T)
        self.wcomb = jnp.dot(self.whr_t, self.whh_t)  # [H, 4H]

    def __call__(self, sequences):
        # sequences: [B, T, input_size] (embedding = Identity here)
        output_last, h_n, c_n = lstm_proj_forward(
            sequences, self.wih_t, self.wcomb, self.whr_t, self.bias,
            n_last=self.n_targets)
        return output_last, (h_n, c_n)


def _reference_forward(model, x):
    """Pure-JAX reference (lax.scan, unfolded weights) used only for a correctness check."""
    H = model.hidden_size
    B = x.shape[0]
    P = model.output_size

    def step(carry, x_t):
        h, c = carry
        gates = x_t @ model.wih_t + h @ model.whh_t + model.bias
        i = jax.nn.sigmoid(gates[:, 0 * H:1 * H])
        f = jax.nn.sigmoid(gates[:, 1 * H:2 * H])
        g = jnp.tanh(gates[:, 2 * H:3 * H])
        o = jax.nn.sigmoid(gates[:, 3 * H:4 * H])
        c = f * c + i * g
        h = (o * jnp.tanh(c)) @ model.whr_t
        return (h, c), h

    init = (jnp.zeros((B, P), jnp.float32), jnp.zeros((B, H), jnp.float32))
    (h_n, c_n), ys = jax.lax.scan(step, init, jnp.transpose(x, (1, 0, 2)))
    out = jnp.transpose(ys, (1, 0, 2))
    return out[:, -model.n_targets:, :], (h_n[None], c_n[None])


if __name__ == "__main__":
    # small shapes consistent with the module's forward
    batch, seq_len, input_size, hidden_size = 2, 8, 16, 32

    key = jax.random.PRNGKey(0)
    x = jax.random.normal(key, (batch, seq_len, input_size), dtype=jnp.float32)

    model = BaselineLSTMPallas(input_size=input_size, hidden_size=hidden_size,
                               n_targets=1, output_size=None,
                               key=jax.random.PRNGKey(42))

    out, (h_n, c_n) = model(x)
    jax.block_until_ready((out, h_n, c_n))

    # sanity check against a pure-JAX reference (unfolded whh/whr weights)
    ref_out, (ref_h, ref_c) = _reference_forward(model, x)
    assert out.shape == (batch, 1, input_size)
    assert h_n.shape == (1, batch, input_size)
    assert c_n.shape == (1, batch, hidden_size)
    # Folding whr into whh changes the f32 summation order slightly; 1e-4 keeps plenty of
    # margin while still catching real bugs (which would be orders of magnitude larger).
    assert jnp.allclose(out, ref_out, atol=1e-4), float(jnp.max(jnp.abs(out - ref_out)))
    assert jnp.allclose(h_n, ref_h, atol=1e-4), float(jnp.max(jnp.abs(h_n - ref_h)))
    assert jnp.allclose(c_n, ref_c, atol=1e-4), float(jnp.max(jnp.abs(c_n - ref_c)))

    print("KERNEL_OK")
</pallas_src>

<mosaic_0001>
module attributes {stable_mosaic.version = 11 : i64} {
  func.func @_lstm_seq_kernel(%arg0: memref<16x16xf32, #tpu.memory_space<vmem>>, %arg1: memref<16x128xf32, #tpu.memory_space<vmem>>, %arg2: memref<32x128xf32, #tpu.memory_space<vmem>>, %arg3: memref<32x16xf32, #tpu.memory_space<vmem>>, %arg4: memref<1x128xf32, #tpu.memory_space<vmem>>, %arg5: memref<2x16xf32, #tpu.memory_space<vmem>>, %arg6: memref<2x16xf32, #tpu.memory_space<vmem>>, %arg7: memref<2x32xf32, #tpu.memory_space<vmem>>) attributes {dimension_semantics = [], scalar_prefetch = 0 : i64, scratch_operands = 0 : i64, tpu.core_type = #tpu.core_type<tc>} {
    %c0 = arith.constant 0 : index
    %c0_0 = arith.constant 0 : index
    %0 = vector.load %arg0[%c0, %c0_0] : memref<16x16xf32, #tpu.memory_space<vmem>>, vector<16x16xf32>
    %c0_1 = arith.constant 0 : index
    %c0_2 = arith.constant 0 : index
    %1 = vector.load %arg1[%c0_1, %c0_2] : memref<16x128xf32, #tpu.memory_space<vmem>>, vector<16x128xf32>
    %cst = arith.constant dense<0.000000e+00> : vector<16x128xf32>
    %2 = tpu.matmul %0, %1, %cst {dimension_numbers = #tpu.dot_dimension_numbers<[1], [0], [0], [1], [0, 0, 1, 1], [], []>} : vector<16x16xf32>, vector<16x128xf32>, vector<16x128xf32> -> vector<16x128xf32>
    %c0_3 = arith.constant 0 : index
    %c0_4 = arith.constant 0 : index
    %3 = vector.load %arg4[%c0_3, %c0_4] : memref<1x128xf32, #tpu.memory_space<vmem>>, vector<1x128xf32>
    %4 = vector.broadcast %3 : vector<1x128xf32> to vector<16x128xf32>
    %5 = arith.addf %2, %4 : vector<16x128xf32>
    %c0_5 = arith.constant 0 : index
    %c0_6 = arith.constant 0 : index
    %6 = vector.load %arg2[%c0_5, %c0_6] : memref<32x128xf32, #tpu.memory_space<vmem>>, vector<32x128xf32>
    %c0_7 = arith.constant 0 : index
    %c0_8 = arith.constant 0 : index
    %7 = vector.load %arg3[%c0_7, %c0_8] : memref<32x16xf32, #tpu.memory_space<vmem>>, vector<32x16xf32>
    %8 = tpu.iota {dimensions = array<i32: 0>} : vector<2x128xi32>
    %9 = vector.extract_strided_slice %5 {offsets = [0, 0], sizes = [1, 128], strides = [1, 1]} : vector<16x128xf32> to vector<1x128xf32>
    %10 = vector.shape_cast %9 : vector<1x128xf32> to vector<1x128xf32>
    %11 = vector.broadcast %10 : vector<1x128xf32> to vector<2x128xf32>
    %12 = vector.extract_strided_slice %5 {offsets = [8, 0], sizes = [1, 128], strides = [1, 1]} : vector<16x128xf32> to vector<1x128xf32>
    %c1_i32 = arith.constant 1 : i32
    %13 = vector.broadcast %c1_i32 : i32 to vector<2x128xi32>
    %14 = arith.cmpi eq, %8, %13 : vector<2x128xi32>
    %15 = vector.shape_cast %12 : vector<1x128xf32> to vector<1x128xf32>
    %16 = vector.broadcast %15 : vector<1x128xf32> to vector<2x128xf32>
    %17 = arith.select %14, %16, %11 : vector<2x128xi1>, vector<2x128xf32>
    %18 = vector.extract_strided_slice %5 {offsets = [1, 0], sizes = [1, 128], strides = [1, 1]} : vector<16x128xf32> to vector<1x128xf32>
    %19 = vector.shape_cast %18 : vector<1x128xf32> to vector<1x128xf32>
    %20 = vector.broadcast %19 : vector<1x128xf32> to vector<2x128xf32>
    %21 = vector.extract_strided_slice %5 {offsets = [9, 0], sizes = [1, 128], strides = [1, 1]} : vector<16x128xf32> to vector<1x128xf32>
    %c1_i32_9 = arith.constant 1 : i32
    %22 = vector.broadcast %c1_i32_9 : i32 to vector<2x128xi32>
    %23 = arith.cmpi eq, %8, %22 : vector<2x128xi32>
    %24 = vector.shape_cast %21 : vector<1x128xf32> to vector<1x128xf32>
    %25 = vector.broadcast %24 : vector<1x128xf32> to vector<2x128xf32>
    %26 = arith.select %23, %25, %20 : vector<2x128xi1>, vector<2x128xf32>
    %27 = vector.extract_strided_slice %5 {offsets = [2, 0], sizes = [1, 128], strides = [1, 1]} : vector<16x128xf32> to vector<1x128xf32>
    %28 = vector.shape_cast %27 : vector<1x128xf32> to vector<1x128xf32>
    %29 = vector.broadcast %28 : vector<1x128xf32> to vector<2x128xf32>
    %30 = vector.extract_strided_slice %5 {offsets = [10, 0], sizes = [1, 128], strides = [1, 1]} : vector<16x128xf32> to vector<1x128xf32>
    %c1_i32_10 = arith.constant 1 : i32
    %31 = vector.broadcast %c1_i32_10 : i32 to vector<2x128xi32>
    %32 = arith.cmpi eq, %8, %31 : vector<2x128xi32>
    %33 = vector.shape_cast %30 : vector<1x128xf32> to vector<1x128xf32>
    %34 = vector.broadcast %33 : vector<1x128xf32> to vector<2x128xf32>
    %35 = arith.select %32, %34, %29 : vector<2x128xi1>, vector<2x128xf32>
    %36 = vector.extract_strided_slice %5 {offsets = [3, 0], sizes = [1, 128], strides = [1, 1]} : vector<16x128xf32> to vector<1x128xf32>
    %37 = vector.shape_cast %36 : vector<1x128xf32> to vector<1x128xf32>
    %38 = vector.broadcast %37 : vector<1x128xf32> to vector<2x128xf32>
    %39 = vector.extract_strided_slice %5 {offsets = [11, 0], sizes = [1, 128], strides = [1, 1]} : vector<16x128xf32> to vector<1x128xf32>
    %c1_i32_11 = arith.constant 1 : i32
    %40 = vector.broadcast %c1_i32_11 : i32 to vector<2x128xi32>
    %41 = arith.cmpi eq, %8, %40 : vector<2x128xi32>
    %42 = vector.shape_cast %39 : vector<1x128xf32> to vector<1x128xf32>
    %43 = vector.broadcast %42 : vector<1x128xf32> to vector<2x128xf32>
    %44 = arith.select %41, %43, %38 : vector<2x128xi1>, vector<2x128xf32>
    %45 = vector.extract_strided_slice %5 {offsets = [4, 0], sizes = [1, 128], strides = [1, 1]} : vector<16x128xf32> to vector<1x128xf32>
    %46 = vector.shape_cast %45 : vector<1x128xf32> to vector<1x128xf32>
    %47 = vector.broadcast %46 : vector<1x128xf32> to vector<2x128xf32>
    %48 = vector.extract_strided_slice %5 {offsets = [12, 0], sizes = [1, 128], strides = [1, 1]} : vector<16x128xf32> to vector<1x128xf32>
    %c1_i32_12 = arith.constant 1 : i32
    %49 = vector.broadcast %c1_i32_12 : i32 to vector<2x128xi32>
    %50 = arith.cmpi eq, %8, %49 : vector<2x128xi32>
    %51 = vector.shape_cast %48 : vector<1x128xf32> to vector<1x128xf32>
    %52 = vector.broadcast %51 : vector<1x128xf32> to vector<2x128xf32>
    %53 = arith.select %50, %52, %47 : vector<2x128xi1>, vector<2x128xf32>
    %54 = vector.extract_strided_slice %5 {offsets = [5, 0], sizes = [1, 128], strides = [1, 1]} : vector<16x128xf32> to vector<1x128xf32>
    %55 = vector.shape_cast %54 : vector<1x128xf32> to vector<1x128xf32>
    %56 = vector.broadcast %55 : vector<1x128xf32> to vector<2x128xf32>
    %57 = vector.extract_strided_slice %5 {offsets = [13, 0], sizes = [1, 128], strides = [1, 1]} : vector<16x128xf32> to vector<1x128xf32>
    %c1_i32_13 = arith.constant 1 : i32
    %58 = vector.broadcast %c1_i32_13 : i32 to vector<2x128xi32>
    %59 = arith.cmpi eq, %8, %58 : vector<2x128xi32>
    %60 = vector.shape_cast %57 : vector<1x128xf32> to vector<1x128xf32>
    %61 = vector.broadcast %60 : vector<1x128xf32> to vector<2x128xf32>
    %62 = arith.select %59, %61, %56 : vector<2x128xi1>, vector<2x128xf32>
    %63 = vector.extract_strided_slice %5 {offsets = [6, 0], sizes = [1, 128], strides = [1, 1]} : vector<16x128xf32> to vector<1x128xf32>
    %64 = vector.shape_cast %63 : vector<1x128xf32> to vector<1x128xf32>
    %65 = vector.broadcast %64 : vector<1x128xf32> to vector<2x128xf32>
    %66 = vector.extract_strided_slice %5 {offsets = [14, 0], sizes = [1, 128], strides = [1, 1]} : vector<16x128xf32> to vector<1x128xf32>
    %c1_i32_14 = arith.constant 1 : i32
    %67 = vector.broadcast %c1_i32_14 : i32 to vector<2x128xi32>
    %68 = arith.cmpi eq, %8, %67 : vector<2x128xi32>
    %69 = vector.shape_cast %66 : vector<1x128xf32> to vector<1x128xf32>
    %70 = vector.broadcast %69 : vector<1x128xf32> to vector<2x128xf32>
    %71 = arith.select %68, %70, %65 : vector<2x128xi1>, vector<2x128xf32>
    %72 = vector.extract_strided_slice %5 {offsets = [7, 0], sizes = [1, 128], strides = [1, 1]} : vector<16x128xf32> to vector<1x128xf32>
    %73 = vector.shape_cast %72 : vector<1x128xf32> to vector<1x128xf32>
    %74 = vector.broadcast %73 : vector<1x128xf32> to vector<2x128xf32>
    %75 = vector.extract_strided_slice %5 {offsets = [15, 0], sizes = [1, 128], strides = [1, 1]} : vector<16x128xf32> to vector<1x128xf32>
    %c1_i32_15 = arith.constant 1 : i32
    %76 = vector.broadcast %c1_i32_15 : i32 to vector<2x128xi32>
    %77 = arith.cmpi eq, %8, %76 : vector<2x128xi32>
    %78 = vector.shape_cast %75 : vector<1x128xf32> to vector<1x128xf32>
    %79 = vector.broadcast %78 : vector<1x128xf32> to vector<2x128xf32>
    %80 = arith.select %77, %79, %74 : vector<2x128xi1>, vector<2x128xf32>
    %cst_16 = arith.constant 0.000000e+00 : f32
    %81 = vector.broadcast %cst_16 : f32 to vector<2x32xf32>
    %cst_17 = arith.constant 0.000000e+00 : f32
    %82 = vector.broadcast %cst_17 : f32 to vector<2x32xf32>
    %cst_18 = arith.constant dense<0.000000e+00> : vector<2x128xf32>
    %83 = tpu.matmul %81, %6, %cst_18 {dimension_numbers = #tpu.dot_dimension_numbers<[1], [0], [0], [1], [0, 0, 1, 1], [], []>} : vector<2x32xf32>, vector<32x128xf32>, vector<2x128xf32> -> vector<2x128xf32>
    %84 = arith.addf %17, %83 : vector<2x128xf32>
    %85 = arith.negf %84 : vector<2x128xf32>
    %86 = math.exp %85 : vector<2x128xf32>
    %cst_19 = arith.constant 1.000000e+00 : f32
    %87 = vector.broadcast %cst_19 : f32 to vector<2x128xf32>
    %88 = arith.addf %87, %86 : vector<2x128xf32>
    %89 = arith.divf %87, %88 : vector<2x128xf32>
    %90 = math.tanh %84 : vector<2x128xf32>
    %91 = vector.extract_strided_slice %89 {offsets = [0, 0], sizes = [2, 32], strides = [1, 1]} : vector<2x128xf32> to vector<2x32xf32>
    %92 = vector.extract_strided_slice %89 {offsets = [0, 32], sizes = [2, 32], strides = [1, 1]} : vector<2x128xf32> to vector<2x32xf32>
    %93 = vector.extract_strided_slice %90 {offsets = [0, 64], sizes = [2, 32], strides = [1, 1]} : vector<2x128xf32> to vector<2x32xf32>
    %94 = vector.extract_strided_slice %89 {offsets = [0, 96], sizes = [2, 32], strides = [1, 1]} : vector<2x128xf32> to vector<2x32xf32>
    %95 = arith.mulf %92, %82 : vector<2x32xf32>
    %96 = arith.mulf %91, %93 : vector<2x32xf32>
    %97 = arith.addf %95, %96 : vector<2x32xf32>
    %98 = math.tanh %97 : vector<2x32xf32>
    %99 = arith.mulf %94, %98 : vector<2x32xf32>
    %cst_20 = arith.constant dense<0.000000e+00> : vector<2x128xf32>
    %100 = tpu.matmul %99, %6, %cst_20 {dimension_numbers = #tpu.dot_dimension_numbers<[1], [0], [0], [1], [0, 0, 1, 1], [], []>} : vector<2x32xf32>, vector<32x128xf32>, vector<2x128xf32> -> vector<2x128xf32>
    %101 = arith.addf %26, %100 : vector<2x128xf32>
    %102 = arith.negf %101 : vector<2x128xf32>
    %103 = math.exp %102 : vector<2x128xf32>
    %cst_21 = arith.constant 1.000000e+00 : f32
    %104 = vector.broadcast %cst_21 : f32 to vector<2x128xf32>
    %105 = arith.addf %104, %103 : vector<2x128xf32>
    %106 = arith.divf %104, %105 : vector<2x128xf32>
    %107 = math.tanh %101 : vector<2x128xf32>
    %108 = vector.extract_strided_slice %106 {offsets = [0, 0], sizes = [2, 32], strides = [1, 1]} : vector<2x128xf32> to vector<2x32xf32>
    %109 = vector.extract_strided_slice %106 {offsets = [0, 32], sizes = [2, 32], strides = [1, 1]} : vector<2x128xf32> to vector<2x32xf32>
    %110 = vector.extract_strided_slice %107 {offsets = [0, 64], sizes = [2, 32], strides = [1, 1]} : vector<2x128xf32> to vector<2x32xf32>
    %111 = vector.extract_strided_slice %106 {offsets = [0, 96], sizes = [2, 32], strides = [1, 1]} : vector<2x128xf32> to vector<2x32xf32>
    %112 = arith.mulf %109, %97 : vector<2x32xf32>
    %113 = arith.mulf %108, %110 : vector<2x32xf32>
    %114 = arith.addf %112, %113 : vector<2x32xf32>
    %115 = math.tanh %114 : vector<2x32xf32>
    %116 = arith.mulf %111, %115 : vector<2x32xf32>
    %cst_22 = arith.constant dense<0.000000e+00> : vector<2x128xf32>
    %117 = tpu.matmul %116, %6, %cst_22 {dimension_numbers = #tpu.dot_dimension_numbers<[1], [0], [0], [1], [0, 0, 1, 1], [], []>} : vector<2x32xf32>, vector<32x128xf32>, vector<2x128xf32> -> vector<2x128xf32>
    %118 = arith.addf %35, %117 : vector<2x128xf32>
    %119 = arith.negf %118 : vector<2x128xf32>
    %120 = math.exp %119 : vector<2x128xf32>
    %cst_23 = arith.constant 1.000000e+00 : f32
    %121 = vector.broadcast %cst_23 : f32 to vector<2x128xf32>
    %122 = arith.addf %121, %120 : vector<2x128xf32>
    %123 = arith.divf %121, %122 : vector<2x128xf32>
    %124 = math.tanh %118 : vector<2x128xf32>
    %125 = vector.extract_strided_slice %123 {offsets = [0, 0], sizes = [2, 32], strides = [1, 1]} : vector<2x128xf32> to vector<2x32xf32>
    %126 = vector.extract_strided_slice %123 {offsets = [0, 32], sizes = [2, 32], strides = [1, 1]} : vector<2x128xf32> to vector<2x32xf32>
    %127 = vector.extract_strided_slice %124 {offsets = [0, 64], sizes = [2, 32], strides = [1, 1]} : vector<2x128xf32> to vector<2x32xf32>
    %128 = vector.extract_strided_slice %123 {offsets = [0, 96], sizes = [2, 32], strides = [1, 1]} : vector<2x128xf32> to vector<2x32xf32>
    %129 = arith.mulf %126, %114 : vector<2x32xf32>
    %130 = arith.mulf %125, %127 : vector<2x32xf32>
    %131 = arith.addf %129, %130 : vector<2x32xf32>
    %132 = math.tanh %131 : vector<2x32xf32>
    %133 = arith.mulf %128, %132 : vector<2x32xf32>
    %cst_24 = arith.constant dense<0.000000e+00> : vector<2x128xf32>
    %134 = tpu.matmul %133, %6, %cst_24 {dimension_numbers = #tpu.dot_dimension_numbers<[1], [0], [0], [1], [0, 0, 1, 1], [], []>} : vector<2x32xf32>, vector<32x128xf32>, vector<2x128xf32> -> vector<2x128xf32>
    %135 = arith.addf %44, %134 : vector<2x128xf32>
    %136 = arith.negf %135 : vector<2x128xf32>
    %137 = math.exp %136 : vector<2x128xf32>
    %cst_25 = arith.constant 1.000000e+00 : f32
    %138 = vector.broadcast %cst_25 : f32 to vector<2x128xf32>
    %139 = arith.addf %138, %137 : vector<2x128xf32>
    %140 = arith.divf %138, %139 : vector<2x128xf32>
    %141 = math.tanh %135 : vector<2x128xf32>
    %142 = vector.extract_strided_slice %140 {offsets = [0, 0], sizes = [2, 32], strides = [1, 1]} : vector<2x128xf32> to vector<2x32xf32>
    %143 = vector.extract_strided_slice %140 {offsets = [0, 32], sizes = [2, 32], strides = [1, 1]} : vector<2x128xf32> to vector<2x32xf32>
    %144 = vector.extract_strided_slice %141 {offsets = [0, 64], sizes = [2, 32], strides = [1, 1]} : vector<2x128xf32> to vector<2x32xf32>
    %145 = vector.extract_strided_slice %140 {offsets = [0, 96], sizes = [2, 32], strides = [1, 1]} : vector<2x128xf32> to vector<2x32xf32>
    %146 = arith.mulf %143, %131 : vector<2x32xf32>
    %147 = arith.mulf %142, %144 : vector<2x32xf32>
    %148 = arith.addf %146, %147 : vector<2x32xf32>
    %149 = math.tanh %148 : vector<2x32xf32>
    %150 = arith.mulf %145, %149 : vector<2x32xf32>
    %cst_26 = arith.constant dense<0.000000e+00> : vector<2x128xf32>
    %151 = tpu.matmul %150, %6, %cst_26 {dimension_numbers = #tpu.dot_dimension_numbers<[1], [0], [0], [1], [0, 0, 1, 1], [], []>} : vector<2x32xf32>, vector<32x128xf32>, vector<2x128xf32> -> vector<2x128xf32>
    %152 = arith.addf %53, %151 : vector<2x128xf32>
    %153 = arith.negf %152 : vector<2x128xf32>
    %154 = math.exp %153 : vector<2x128xf32>
    %cst_27 = arith.constant 1.000000e+00 : f32
    %155 = vector.broadcast %cst_27 : f32 to vector<2x128xf32>
    %156 = arith.addf %155, %154 : vector<2x128xf32>
    %157 = arith.divf %155, %156 : vector<2x128xf32>
    %158 = math.tanh %152 : vector<2x128xf32>
    %159 = vector.extract_strided_slice %157 {offsets = [0, 0], sizes = [2, 32], strides = [1, 1]} : vector<2x128xf32> to vector<2x32xf32>
    %160 = vector.extract_strided_slice %157 {offsets = [0, 32], sizes = [2, 32], strides = [1, 1]} : vector<2x128xf32> to vector<2x32xf32>
    %161 = vector.extract_strided_slice %158 {offsets = [0, 64], sizes = [2, 32], strides = [1, 1]} : vector<2x128xf32> to vector<2x32xf32>
    %162 = vector.extract_strided_slice %157 {offsets = [0, 96], sizes = [2, 32], strides = [1, 1]} : vector<2x128xf32> to vector<2x32xf32>
    %163 = arith.mulf %160, %148 : vector<2x32xf32>
    %164 = arith.mulf %159, %161 : vector<2x32xf32>
    %165 = arith.addf %163, %164 : vector<2x32xf32>
    %166 = math.tanh %165 : vector<2x32xf32>
    %167 = arith.mulf %162, %166 : vector<2x32xf32>
    %cst_28 = arith.constant dense<0.000000e+00> : vector<2x128xf32>
    %168 = tpu.matmul %167, %6, %cst_28 {dimension_numbers = #tpu.dot_dimension_numbers<[1], [0], [0], [1], [0, 0, 1, 1], [], []>} : vector<2x32xf32>, vector<32x128xf32>, vector<2x128xf32> -> vector<2x128xf32>
    %169 = arith.addf %62, %168 : vector<2x128xf32>
    %170 = arith.negf %169 : vector<2x128xf32>
    %171 = math.exp %170 : vector<2x128xf32>
    %cst_29 = arith.constant 1.000000e+00 : f32
    %172 = vector.broadcast %cst_29 : f32 to vector<2x128xf32>
    %173 = arith.addf %172, %171 : vector<2x128xf32>
    %174 = arith.divf %172, %173 : vector<2x128xf32>
    %175 = math.tanh %169 : vector<2x128xf32>
    %176 = vector.extract_strided_slice %174 {offsets = [0, 0], sizes = [2, 32], strides = [1, 1]} : vector<2x128xf32> to vector<2x32xf32>
    %177 = vector.extract_strided_slice %174 {offsets = [0, 32], sizes = [2, 32], strides = [1, 1]} : vector<2x128xf32> to vector<2x32xf32>
    %178 = vector.extract_strided_slice %175 {offsets = [0, 64], sizes = [2, 32], strides = [1, 1]} : vector<2x128xf32> to vector<2x32xf32>
    %179 = vector.extract_strided_slice %174 {offsets = [0, 96], sizes = [2, 32], strides = [1, 1]} : vector<2x128xf32> to vector<2x32xf32>
    %180 = arith.mulf %177, %165 : vector<2x32xf32>
    %181 = arith.mulf %176, %178 : vector<2x32xf32>
    %182 = arith.addf %180, %181 : vector<2x32xf32>
    %183 = math.tanh %182 : vector<2x32xf32>
    %184 = arith.mulf %179, %183 : vector<2x32xf32>
    %cst_30 = arith.constant dense<0.000000e+00> : vector<2x128xf32>
    %185 = tpu.matmul %184, %6, %cst_30 {dimension_numbers = #tpu.dot_dimension_numbers<[1], [0], [0], [1], [0, 0, 1, 1], [], []>} : vector<2x32xf32>, vector<32x128xf32>, vector<2x128xf32> -> vector<2x128xf32>
    %186 = arith.addf %71, %185 : vector<2x128xf32>
    %187 = arith.negf %186 : vector<2x128xf32>
    %188 = math.exp %187 : vector<2x128xf32>
    %cst_31 = arith.constant 1.000000e+00 : f32
    %189 = vector.broadcast %cst_31 : f32 to vector<2x128xf32>
    %190 = arith.addf %189, %188 : vector<2x128xf32>
    %191 = arith.divf %189, %190 : vector<2x128xf32>
    %192 = math.tanh %186 : vector<2x128xf32>
    %193 = vector.extract_strided_slice %191 {offsets = [0, 0], sizes = [2, 32], strides = [1, 1]} : vector<2x128xf32> to vector<2x32xf32>
    %194 = vector.extract_strided_slice %191 {offsets = [0, 32], sizes = [2, 32], strides = [1, 1]} : vector<2x128xf32> to vector<2x32xf32>
    %195 = vector.extract_strided_slice %192 {offsets = [0, 64], sizes = [2, 32], strides = [1, 1]} : vector<2x128xf32> to vector<2x32xf32>
    %196 = vector.extract_strided_slice %191 {offsets = [0, 96], sizes = [2, 32], strides = [1, 1]} : vector<2x128xf32> to vector<2x32xf32>
    %197 = arith.mulf %194, %182 : vector<2x32xf32>
    %198 = arith.mulf %193, %195 : vector<2x32xf32>
    %199 = arith.addf %197, %198 : vector<2x32xf32>
    %200 = math.tanh %199 : vector<2x32xf32>
    %201 = arith.mulf %196, %200 : vector<2x32xf32>
    %cst_32 = arith.constant dense<0.000000e+00> : vector<2x128xf32>
    %202 = tpu.matmul %201, %6, %cst_32 {dimension_numbers = #tpu.dot_dimension_numbers<[1], [0], [0], [1], [0, 0, 1, 1], [], []>} : vector<2x32xf32>, vector<32x128xf32>, vector<2x128xf32> -> vector<2x128xf32>
    %203 = arith.addf %80, %202 : vector<2x128xf32>
    %204 = arith.negf %203 : vector<2x128xf32>
    %205 = math.exp %204 : vector<2x128xf32>
    %cst_33 = arith.constant 1.000000e+00 : f32
    %206 = vector.broadcast %cst_33 : f32 to vector<2x128xf32>
    %207 = arith.addf %206, %205 : vector<2x128xf32>
    %208 = arith.divf %206, %207 : vector<2x128xf32>
    %209 = math.tanh %203 : vector<2x128xf32>
    %210 = vector.extract_strided_slice %208 {offsets = [0, 0], sizes = [2, 32], strides = [1, 1]} : vector<2x128xf32> to vector<2x32xf32>
    %211 = vector.extract_strided_slice %208 {offsets = [0, 32], sizes = [2, 32], strides = [1, 1]} : vector<2x128xf32> to vector<2x32xf32>
    %212 = vector.extract_strided_slice %209 {offsets = [0, 64], sizes = [2, 32], strides = [1, 1]} : vector<2x128xf32> to vector<2x32xf32>
    %213 = vector.extract_strided_slice %208 {offsets = [0, 96], sizes = [2, 32], strides = [1, 1]} : vector<2x128xf32> to vector<2x32xf32>
    %214 = arith.mulf %211, %199 : vector<2x32xf32>
    %215 = arith.mulf %210, %212 : vector<2x32xf32>
    %216 = arith.addf %214, %215 : vector<2x32xf32>
    %217 = math.tanh %216 : vector<2x32xf32>
    %218 = arith.mulf %213, %217 : vector<2x32xf32>
    %cst_34 = arith.constant dense<0.000000e+00> : vector<2x16xf32>
    %219 = tpu.matmul %218, %7, %cst_34 {dimension_numbers = #tpu.dot_dimension_numbers<[1], [0], [0], [1], [0, 0, 1, 1], [], []>} : vector<2x32xf32>, vector<32x16xf32>, vector<2x16xf32> -> vector<2x16xf32>
    %c0_35 = arith.constant 0 : index
    %c0_36 = arith.constant 0 : index
    %220 = vector.load %arg5[%c0_35, %c0_36] : memref<2x16xf32, #tpu.memory_space<vmem>>, vector<2x16xf32>
    tpu.vector_store %arg5[%c0_35, %c0_36], %219 {strides = array<i32>} : memref<2x16xf32, #tpu.memory_space<vmem>>, vector<2x16xf32>,
    %c0_37 = arith.constant 0 : index
    %c0_38 = arith.constant 0 : index
    %221 = vector.load %arg6[%c0_37, %c0_38] : memref<2x16xf32, #tpu.memory_space<vmem>>, vector<2x16xf32>
    tpu.vector_store %arg6[%c0_37, %c0_38], %219 {strides = array<i32>} : memref<2x16xf32, #tpu.memory_space<vmem>>, vector<2x16xf32>,
    %c0_39 = arith.constant 0 : index
    %c0_40 = arith.constant 0 : index
    %222 = vector.load %arg7[%c0_39, %c0_40] : memref<2x32xf32, #tpu.memory_space<vmem>>, vector<2x32xf32>
    tpu.vector_store %arg7[%c0_39, %c0_40], %216 {strides = array<i32>} : memref<2x32xf32, #tpu.memory_space<vmem>>, vector<2x32xf32>,
    return
  }
}

</mosaic_0001>

<bundles_post_ra>
// kernel: lstm_proj_forward.1
= control target key start
LH: loop header
LB: loop body
LE: loop exit
PB: predicated region body
PF: predicated region fallthrough
CT: control target
= control target key end

     0   :  { %13 = vsyncpa [#allocation3], 0  ;;  %s1814_s0 = inlined_call_operand.vmem [shape: f32[16,16], index: 0, kind: input, shape index: {}]   ;;  %s1815_s1 = inlined_call_operand.hbm [shape: f32[16,128], index: 1, kind: input, shape index: {}]   ;;  %s1816_s2 = inlined_call_operand.vmem [shape: f32[32,128], index: 2, kind: input, shape index: {}]   ;;  %s1817_s3 = inlined_call_operand.vmem [shape: f32[32,16], index: 3, kind: input, shape index: {}]   ;;  %s1818_s4 = inlined_call_operand.vmem [shape: f32[1,128], index: 4, kind: input, shape index: {}]   ;;  %s1819_s5 = inlined_call_operand.hbm [shape: f32[2,16], index: 5, kind: output, shape index: {0}]   ;;  %s1820_s6 = inlined_call_operand.hbm [shape: f32[2,16], index: 6, kind: output, shape index: {1}]   ;;  %s1821_s7 = inlined_call_operand.hbm [shape: f32[2,32], index: 7, kind: output, shape index: {2}]  }
   0x1   :  { %14 = vsyncpa [#allocation4], 0 }
   0x2   :  { %15 = vsyncpa [#allocation7], 0  ;;  %s1542_s24 = smov [#allocation2]   ;;  %s1448_s28 = scalar_lea.hbm %s1815_s1, 256 }
   0x3   :  { %s23_s25 = sshll.u32 %s1542_s24, 4  ;;  %p1449_p0 = scmp.ne.s32.totalorder %s1815_s1, %s1448_s28  ;;  %s24_s25 = int_to_ptr.vmem [resolvable:$true] %s23_s25 }
   0x4   :  { %p1452_p1 = scmp.lt.u32.totalorder %s1448_s28, %s1815_s1 }
   0x6   :  { %p1454_p2 = pnand %p1452_p1, %p1449_p0 }
   0x8   :  { %1457 = shalt.err (!%p1454_p2)
}
   0x9   :  { %s1458_s10 = scalar_lea.vmem %s24_s25, 256  ;;  %p1463_p4 = scmp.lt.s32.totalorder %s24_s25, %s24_s25 }
   0xa   :  { %p1459_p3 = scmp.ne.s32.totalorder %s24_s25, %s1458_s10  ;;  %p1464_p5 = scmp.lt.s32.totalorder %s1458_s10, %s1458_s10 }
   0xc   :  { %p1465_p6 = por %p1464_p5, %p1463_p4 }
   0xe   :  { %p1466_p7 = pnand %p1465_p6, %p1459_p3 }
  0x10   :  { %1469 = shalt.err (!%p1466_p7)
}
  0x11   :  { %s1543_s11 = smov 128   ;;  %s1544_s12 = smov 8  }
  0x12   :  { %29 = dma.hbm_to_vmem [thread:$0]  %s1815_s1, 256, %s24_s25, [#allocation3], %s1543_s11, %s1543_s11, %s1544_s12  }
  0x13   :  { %1536 = dma.done.wait [#allocation3], 256  }
  0x14   :  { %1537 = vsyncadd [#allocation3], 4294967040  ;;  %v1545_v0 = vmov 0.0|0.0   ;;  %vm1546_vm0 = vmmov 0   ;;  %v1547_v1 = vmov 0.0   ;;  %vm50_vm1 = vcmask 130048  }
  0x15   :  { %1318 = vmatprep.subr.bf16.mxu1 %v1545_v0  ;;  %1223 = vmatprep.mubr.msk.f32.mxu1 %vm1546_vm0, %v1547_v1  ;;  %v41_v2 = vld [vmem:[#allocation2] sm:$0xff]  ;;  %v42_v3 = vld [vmem:[#allocation2 + $0x8] sm:$0xff]  ;;  %v134_v9 = vld [vmem:[%s1816_s2 + $0x10] sm:$0xff]  ;;  %v140_v13 = vlaneseq  ;;  %s1549_s26 = smov 32   ;;  %vm215_vm3 = vcmask 261120   ;;  %s1550_s12 = smov 96  }
  0x16   :  { %v132_v4 = vld [vmem:[%s1816_s2] sm:$0xff]  ;;  %v1314_v5 = vpack.c.bf16 %v42_v3, %v41_v2  ;;  %v133_v6 = vld [vmem:[%s1816_s2 + $0x8] sm:$0xff]  ;;  %v135_v10 = vld [vmem:[%s1816_s2 + $0x18] sm:$0xff]  ;;  %vm1096_vm4 = vcmask 254976   ;;  %s1552_s14 = smov [#allocation5]   ;;  %vm1089_vm5 = vcmask 123904  }
  0x17   :  { %v39_v7 = vld [vmem:[%s1814_s0] sm:$0xff]  ;;  %v1618_v8 = vpack.c.bf16 %v133_v6, %v132_v4  ;;  %v40_v11 = vld [vmem:[%s1814_s0 + $0x8] sm:$0xff]  ;;  %v1631_v12 = vpack.c.bf16 %v135_v10, %v134_v9  ;;  %v141_v14 = vshrl.u32 %v140_v13, 7  ;;  %s1104_s15 = sshll.u32 %s1552_s14, 4  ;;  %s1553_s16 = smov [#allocation8]   ;;  %s1764_s15 = int_to_ptr.vmem [resolvable:$true] %s1104_s15 }
  0x18   :  { %1212 = vmatprep.mubr.msk.f32.mxu0 %vm50_vm1, %v39_v7  ;;  %1315 = vmatprep.subr.bf16.mxu0 %v1314_v5  ;;  %v1140_v15 = vld [vmem:[%s1818_s4] ss:$0 sm:$0xff]  ;;  %s1548_s4 = smov 64   ;;  %s1124_s17 = sshll.u32 %s1553_s16, 4  ;;  %s1766_s17 = int_to_ptr.vmem [resolvable:$true] %s1124_s17 }
  0x19   :  { %1317 = vmatpush3.bf16.msra.mxu0 %v1314_v5  ;;  %1320 = vmatpush3.bf16.msra.mxu1 %v1618_v8  ;;  %v144_v16 = vsub.s32 0, %v141_v14  ;;  %v154_v17 = vsub.s32 1, %v141_v14  ;;  %v163_v18 = vsub.s32 2, %v141_v14  ;;  %v172_v19 = vsub.s32 3, %v141_v14 }
  0x1a   :  { %1321 = vmatprep.subr.bf16.mxu1 %v1545_v0  ;;  %1324 = vmatprep.subr.bf16.mxu0 %v1545_v0  ;;  %v181_v23 = vsub.s32 4, %v141_v14  ;;  %v190_v24 = vsub.s32 5, %v141_v14  ;;  %vm146_vm2 = vcmp.eq.s32.totalorder %v141_v14, 1  ;;  %v199_v26 = vsub.s32 6, %v141_v14 }
  0x1b   :  { %v208_v27 = vsub.s32 7, %v141_v14 }
  0x1c   :  { %1213 = vmatmul.mubr.msk.f32.vlgmr.msra.gmra.mrb[0].mxu0 %vm50_vm1, %v40_v11 }
  0x1d   :  { %1323 = vmatpush3.bf16.msra.mxu1 %v1631_v12  ;;  %1326 = vmatpush3.bf16.msra.mxu0 %v1618_v8 }
  0x1e   :  { %1327 = vmatprep.subr.bf16.mxu0 %v1545_v0  ;;  %1234 = vmatprep.mubr.msk.f32.mxu0 %vm1546_vm0, %v1547_v1 }
  0x1f   :  { %1330 = vmatprep.subr.bf16.mxu1 %v1545_v0 }
  0x20   :  { %1224 = vmatmul.mubr.f32.vlgmr.msra.gmra.mrb[0].mxu1 %v1547_v1 }
  0x21   :  { %1329 = vmatpush3.bf16.msra.mxu0 %v1631_v12  ;;  %1332 = vmatpush3.bf16.msra.mxu1 %v1618_v8 }
  0x22   :  { %1333 = vmatprep.subr.bf16.mxu1 %v1545_v0  ;;  %1245 = vmatprep.mubr.msk.f32.mxu1 %vm1546_vm0, %v1547_v1 }
  0x23   :  { %1336 = vmatprep.subr.bf16.mxu0 %v1545_v0 }
  0x25   :  { %1335 = vmatpush3.bf16.msra.mxu1 %v1631_v12 }
  0x26   :  { %1342 = vmatprep.subr.bf16.mxu1 %v1545_v0 }
  0xef   :  { %v1214_v20 = vpop.f32.mrb[0].mxu0 }
  0xf0   :  { %v129_v21 = vadd.f32 %v1214_v20, %v1140_v15  ;;  %v123_v22 = vpop.f32.mrb[1].mxu0 }
  0xf1   :  { %v124_v25 = vadd.f32 %v1140_v15, %v123_v22 }
  0xf2   :  { %v150_v28 = vrot.slane %v129_v21, %v144_v16  ;;  %v159_v29 = vrot.slane %v129_v21, %v154_v17  ;;  %v168_v30 = vrot.slane %v129_v21, %v163_v18  ;;  %v177_v31 = vrot.slane %v129_v21, %v172_v19 }
  0xf3   :  { %v145_v32 = vrot.slane %v124_v25, %v144_v16  ;;  %v285_v33 = vpop.f32.mrb[0].mxu1  ;;  %v155_v34 = vrot.slane %v124_v25, %v154_v17  ;;  %v164_v35 = vrot.slane %v124_v25, %v163_v18  ;;  %v173_v36 = vrot.slane %v124_v25, %v172_v19 }
  0xf4   :  { %v1225_v37 = vpop.f32.mrb[1].mxu1  ;;  %v182_v38 = vrot.slane %v124_v25, %v181_v23  ;;  %v186_v39 = vrot.slane %v129_v21, %v181_v23  ;;  %v191_v40 = vrot.slane %v124_v25, %v190_v24  ;;  %v195_v41 = vrot.slane %v129_v21, %v190_v24 }
  0xf5   :  { %v151_v42 = vsel %vm146_vm2, %v150_v28, %v145_v32  ;;  %v160_v43 = vsel %vm146_vm2, %v159_v29, %v155_v34  ;;  %v1657_v44 = vsel %vm146_vm2, %v168_v30, %v164_v35  ;;  %v1660_v45 = vsel %vm146_vm2, %v177_v31, %v173_v36 }
  0xf6   :  { %v289_v46 = vadd.f32 %v285_v33, %v151_v42  ;;  %v1663_v47 = vsel %vm146_vm2, %v186_v39, %v182_v38  ;;  %v1666_v48 = vsel %vm146_vm2, %v195_v41, %v191_v40  ;;  %v200_v49 = vrot.slane %v124_v25, %v199_v26 }
  0xf7   :  { %v204_v50 = vrot.slane %v129_v21, %v199_v26  ;;  %v209_v51 = vrot.slane %v124_v25, %v208_v27  ;;  %v213_v52 = vrot.slane %v129_v21, %v208_v27 }
  0xf8   :  { %1384 = vtanh.f32 %v289_v46  ;;  %v1143_v56 = vmul.f32 -1.442695, %v289_v46 }
  0xf9   :  { %v1669_v53 = vsel %vm146_vm2, %v204_v50, %v200_v49  ;;  %v1672_v54 = vsel %vm146_vm2, %v213_v52, %v209_v51 }
  0xfa   :  { %1386 = vpow2.f32 %v1143_v56 }
 0x102   :  { %v1385_v55 = vpop.eup %1384 }
 0x103   :  { %299 = vrot.lane.b32.xlu0 %v1385_v55, %s1548_s4 }
 0x104   :  { %v1387_v57 = vpop.eup %1386 }
 0x105   :  { %v293_v58 = vadd.f32 1.0, %v1387_v57 }
 0x107   :  { %1388 = vrcp.f32 %v293_v58 }
 0x111   :  { %v1389_v59 = vpop.eup %1388 }
 0x112   :  { %v297_v62 = vmul.f32 0.0, %v1389_v59 }
 0x175   :  { %v300_v60 = vpop.permute.xlu0 %299 }
 0x176   :  { %v302_v61 = vmul.f32 %v1389_v59, %v300_v60 }
 0x178   :  { %304 = vrot.lane.b32.xlu0 %v302_v61, %s1549_s26 }
 0x1ea   :  { %v305_v63 = vpop.permute.xlu0 %304 }
 0x1eb   :  { %v307_v2 = vadd.f32 %v305_v63, %v297_v62 }
 0x1ed   :  { %1390 = vtanh.f32 %v307_v2 }
 0x1f7   :  { %v1391_v3 = vpop.eup %1390 }
 0x1f8   :  { %310 = vrot.lane.b32.xlu1 %v1391_v3, %s1548_s4 }
 0x26a   :  { %v311_v4 = vpop.permute.xlu1 %310 }
 0x26b   :  { %v313_v5 = vmul.f32 %v1389_v59, %v311_v4 }
 0x26d   :  { %315 = vrot.lane.b32.xlu1 %v313_v5, %s1549_s26 }
 0x2df   :  { %v316_v6 = vpop.permute.xlu1 %315 }
 0x2e0   :  { %1235 = vmatmul.mubr.msk.f32.vlgmr.msra.gmra.mrb[2].mxu0 %vm215_vm3, %v316_v6 }
 0x2e1   :  { %1338 = vmatpush3.bf16.msra.mxu0 %v1618_v8  ;;  %1256 = vmatprep.mubr.msk.f32.mxu0 %vm1546_vm0, %v1547_v1 }
 0x2e2   :  { %1339 = vmatprep.subr.bf16.mxu0 %v1545_v0 }
 0x2e5   :  { %1341 = vmatpush3.bf16.msra.mxu0 %v1631_v12 }
 0x2e6   :  { %1348 = vmatprep.subr.bf16.mxu0 %v1545_v0 }
 0x3b3   :  { %v385_v7 = vpop.f32.mrb[2].mxu0 }
 0x3b4   :  { %v389_v9 = vadd.f32 %v385_v7, %v160_v43  ;;  %v1236_v10 = vpop.f32.mrb[3].mxu0 }
 0x3b6   :  { %1392 = vtanh.f32 %v389_v9  ;;  %v1145_v13 = vmul.f32 -1.442695, %v389_v9 }
 0x3b8   :  { %1394 = vpow2.f32 %v1145_v13 }
 0x3c0   :  { %v1393_v11 = vpop.eup %1392 }
 0x3c1   :  { %399 = vrot.lane.b32.xlu0 %v1393_v11, %s1548_s4 }
 0x3c2   :  { %v1395_v14 = vpop.eup %1394 }
 0x3c3   :  { %v393_v15 = vadd.f32 1.0, %v1395_v14 }
 0x3c5   :  { %1396 = vrcp.f32 %v393_v15 }
 0x3cf   :  { %v1397_v16 = vpop.eup %1396 }
 0x3d0   :  { %v397_v19 = vmul.f32 %v1397_v16, %v307_v2 }
 0x433   :  { %v400_v17 = vpop.permute.xlu0 %399 }
 0x434   :  { %v402_v18 = vmul.f32 %v1397_v16, %v400_v17 }
 0x436   :  { %404 = vrot.lane.b32.xlu1 %v402_v18, %s1549_s26 }
 0x4a8   :  { %v405_v20 = vpop.permute.xlu1 %404 }
 0x4a9   :  { %v407_v21 = vadd.f32 %v405_v20, %v397_v19 }
 0x4ab   :  { %1398 = vtanh.f32 %v407_v21 }
 0x4b5   :  { %v1399_v22 = vpop.eup %1398 }
 0x4b6   :  { %410 = vrot.lane.b32.xlu0 %v1399_v22, %s1548_s4 }
 0x528   :  { %v411_v23 = vpop.permute.xlu0 %410 }
 0x529   :  { %v413_v24 = vmul.f32 %v1397_v16, %v411_v23 }
 0x52b   :  { %415 = vrot.lane.b32.xlu1 %v413_v24, %s1549_s26 }
 0x59d   :  { %v416_v25 = vpop.permute.xlu1 %415 }
 0x59e   :  { %1246 = vmatmul.mubr.msk.f32.vlgmr.msra.gmra.mrb[2].mxu1 %vm215_vm3, %v416_v25 }
 0x59f   :  { %1344 = vmatpush3.bf16.msra.mxu1 %v1618_v8  ;;  %1267 = vmatprep.mubr.msk.f32.mxu1 %vm1546_vm0, %v1547_v1 }
 0x5a0   :  { %1345 = vmatprep.subr.bf16.mxu1 %v1545_v0 }
 0x5a3   :  { %1347 = vmatpush3.bf16.msra.mxu1 %v1631_v12 }
 0x5a4   :  { %1354 = vmatprep.subr.bf16.mxu1 %v1545_v0 }
 0x671   :  { %v485_v26 = vpop.f32.mrb[2].mxu1 }
 0x672   :  { %v489_v27 = vadd.f32 %v485_v26, %v1657_v44  ;;  %v1247_v28 = vpop.f32.mrb[3].mxu1 }
 0x674   :  { %1400 = vtanh.f32 %v489_v27  ;;  %v1147_v30 = vmul.f32 -1.442695, %v489_v27 }
 0x676   :  { %1402 = vpow2.f32 %v1147_v30 }
 0x67e   :  { %v1401_v29 = vpop.eup %1400 }
 0x67f   :  { %499 = vrot.lane.b32.xlu0 %v1401_v29, %s1548_s4 }
 0x680   :  { %v1403_v31 = vpop.eup %1402 }
 0x681   :  { %v493_v32 = vadd.f32 1.0, %v1403_v31 }
 0x683   :  { %1404 = vrcp.f32 %v493_v32 }
 0x68d   :  { %v1405_v33 = vpop.eup %1404 }
 0x68e   :  { %v497_v36 = vmul.f32 %v1405_v33, %v407_v21 }
 0x6f1   :  { %v500_v34 = vpop.permute.xlu0 %499 }
 0x6f2   :  { %v502_v35 = vmul.f32 %v1405_v33, %v500_v34 }
 0x6f4   :  { %504 = vrot.lane.b32.xlu1 %v502_v35, %s1549_s26 }
 0x766   :  { %v505_v37 = vpop.permute.xlu1 %504 }
 0x767   :  { %v507_v38 = vadd.f32 %v505_v37, %v497_v36 }
 0x769   :  { %1406 = vtanh.f32 %v507_v38 }
 0x773   :  { %v1407_v39 = vpop.eup %1406 }
 0x774   :  { %510 = vrot.lane.b32.xlu0 %v1407_v39, %s1548_s4 }
 0x7e6   :  { %v511_v40 = vpop.permute.xlu0 %510 }
 0x7e7   :  { %v513_v41 = vmul.f32 %v1405_v33, %v511_v40 }
 0x7e9   :  { %515 = vrot.lane.b32.xlu1 %v513_v41, %s1549_s26 }
 0x85b   :  { %v516_v42 = vpop.permute.xlu1 %515 }
 0x85c   :  { %1257 = vmatmul.mubr.msk.f32.vlgmr.msra.gmra.mrb[4].mxu0 %vm215_vm3, %v516_v42 }
 0x85d   :  { %1350 = vmatpush3.bf16.msra.mxu0 %v1618_v8  ;;  %1278 = vmatprep.mubr.msk.f32.mxu0 %vm1546_vm0, %v1547_v1 }
 0x85e   :  { %1351 = vmatprep.subr.bf16.mxu0 %v1545_v0 }
 0x861   :  { %1353 = vmatpush3.bf16.msra.mxu0 %v1631_v12 }
 0x862   :  { %1360 = vmatprep.subr.bf16.mxu0 %v1545_v0 }
 0x92f   :  { %v585_v43 = vpop.f32.mrb[4].mxu0 }
 0x930   :  { %v589_v44 = vadd.f32 %v585_v43, %v1660_v45  ;;  %v1258_v46 = vpop.f32.mrb[5].mxu0 }
 0x932   :  { %1408 = vtanh.f32 %v589_v44  ;;  %v1149_v50 = vmul.f32 -1.442695, %v589_v44 }
 0x934   :  { %1410 = vpow2.f32 %v1149_v50 }
 0x93c   :  { %v1409_v49 = vpop.eup %1408 }
 0x93d   :  { %599 = vrot.lane.b32.xlu0 %v1409_v49, %s1548_s4 }
 0x93e   :  { %v1411_v51 = vpop.eup %1410 }
 0x93f   :  { %v593_v52 = vadd.f32 1.0, %v1411_v51 }
 0x941   :  { %1412 = vrcp.f32 %v593_v52 }
 0x94b   :  { %v1413_v55 = vpop.eup %1412 }
 0x94c   :  { %v597_v58 = vmul.f32 %v1413_v55, %v507_v38 }
 0x9af   :  { %v600_v56 = vpop.permute.xlu0 %599 }
 0x9b0   :  { %v602_v57 = vmul.f32 %v1413_v55, %v600_v56 }
 0x9b2   :  { %604 = vrot.lane.b32.xlu1 %v602_v57, %s1549_s26 }
 0xa24   :  { %v605_v59 = vpop.permute.xlu1 %604 }
 0xa25   :  { %v607_v60 = vadd.f32 %v605_v59, %v597_v58 }
 0xa27   :  { %1414 = vtanh.f32 %v607_v60 }
 0xa31   :  { %v1415_v45 = vpop.eup %1414 }
 0xa32   :  { %610 = vrot.lane.b32.xlu0 %v1415_v45, %s1548_s4 }
 0xaa4   :  { %v611_v61 = vpop.permute.xlu0 %610 }
 0xaa5   :  { %v613_v62 = vmul.f32 %v1413_v55, %v611_v61 }
 0xaa7   :  { %615 = vrot.lane.b32.xlu1 %v613_v62, %s1549_s26 }
 0xb19   :  { %v616_v63 = vpop.permute.xlu1 %615 }
 0xb1a   :  { %1268 = vmatmul.mubr.msk.f32.vlgmr.msra.gmra.mrb[4].mxu1 %vm215_vm3, %v616_v63 }
 0xb1b   :  { %1356 = vmatpush3.bf16.msra.mxu1 %v1618_v8  ;;  %1289 = vmatprep.mubr.msk.f32.mxu1 %vm1546_vm0, %v1547_v1 }
 0xb1c   :  { %1357 = vmatprep.subr.bf16.mxu1 %v1545_v0 }
 0xb1f   :  { %1359 = vmatpush3.bf16.msra.mxu1 %v1631_v12 }
 0xb20   :  { %1366 = vmatprep.subr.bf16.mxu1 %v1545_v0 }
 0xbed   :  { %v685_v2 = vpop.f32.mrb[4].mxu1 }
 0xbee   :  { %v689_v3 = vadd.f32 %v685_v2, %v1663_v47  ;;  %v1269_v4 = vpop.f32.mrb[5].mxu1 }
 0xbef   :  { %v137_v4 = vld [vmem:[%s1817_s3 + $0x8] sm:$0xff] }
 0xbf0   :  { %1416 = vtanh.f32 %v689_v3  ;;  %v1151_v6 = vmul.f32 -1.442695, %v689_v3 }
 0xbf2   :  { %1418 = vpow2.f32 %v1151_v6 }
 0xbfa   :  { %v1417_v5 = vpop.eup %1416 }
 0xbfb   :  { %699 = vrot.lane.b32.xlu0 %v1417_v5, %s1548_s4  ;;  %v138_v5 = vld [vmem:[%s1817_s3 + $0x10] sm:$0xff] }
 0xbfc   :  { %v1419_v7 = vpop.eup %1418 }
 0xbfd   :  { %v693_v9 = vadd.f32 1.0, %v1419_v7  ;;  %v139_v7 = vld [vmem:[%s1817_s3 + $0x18] sm:$0xff] }
 0xbff   :  { %1420 = vrcp.f32 %v693_v9  ;;  %v1370_v9 = vpack.c.bf16 %v139_v7, %v138_v5 }
 0xc09   :  { %v1421_v10 = vpop.eup %1420 }
 0xc0a   :  { %v697_v14 = vmul.f32 %v1421_v10, %v607_v60 }
 0xc6d   :  { %v700_v11 = vpop.permute.xlu0 %699 }
 0xc6e   :  { %v702_v13 = vmul.f32 %v1421_v10, %v700_v11 }
 0xc70   :  { %704 = vrot.lane.b32.xlu1 %v702_v13, %s1549_s26 }
 0xce2   :  { %v705_v15 = vpop.permute.xlu1 %704 }
 0xce3   :  { %v707_v16 = vadd.f32 %v705_v15, %v697_v14 }
 0xce5   :  { %1422 = vtanh.f32 %v707_v16 }
 0xcef   :  { %v1423_v47 = vpop.eup %1422 }
 0xcf0   :  { %710 = vrot.lane.b32.xlu0 %v1423_v47, %s1548_s4 }
 0xd62   :  { %v711_v17 = vpop.permute.xlu0 %710 }
 0xd63   :  { %v713_v18 = vmul.f32 %v1421_v10, %v711_v17 }
 0xd65   :  { %715 = vrot.lane.b32.xlu1 %v713_v18, %s1549_s26 }
 0xdd7   :  { %v716_v19 = vpop.permute.xlu1 %715 }
 0xdd8   :  { %1279 = vmatmul.mubr.msk.f32.vlgmr.msra.gmra.mrb[6].mxu0 %vm215_vm3, %v716_v19 }
 0xdd9   :  { %1362 = vmatpush3.bf16.msra.mxu0 %v1618_v8  ;;  %1300 = vmatprep.mubr.msk.f32.mxu0 %vm1546_vm0, %v1547_v1 }
 0xdda   :  { %1363 = vmatprep.subr.bf16.mxu0 %v1545_v0 }
 0xddd   :  { %1365 = vmatpush3.bf16.msra.mxu0 %v1631_v12 }
 0xeab   :  { %v785_v20 = vpop.f32.mrb[6].mxu0 }
 0xeac   :  { %v789_v21 = vadd.f32 %v785_v20, %v1666_v48  ;;  %v1280_v22 = vpop.f32.mrb[7].mxu0 }
 0xeae   :  { %1424 = vtanh.f32 %v789_v21  ;;  %v1153_v24 = vmul.f32 -1.442695, %v789_v21 }
 0xeb0   :  { %1426 = vpow2.f32 %v1153_v24 }
 0xeb8   :  { %v1425_v23 = vpop.eup %1424 }
 0xeb9   :  { %799 = vrot.lane.b32.xlu0 %v1425_v23, %s1548_s4 }
 0xeba   :  { %v1427_v25 = vpop.eup %1426 }
 0xebb   :  { %v793_v26 = vadd.f32 1.0, %v1427_v25 }
 0xebd   :  { %1428 = vrcp.f32 %v793_v26 }
 0xec7   :  { %v1429_v8 = vpop.eup %1428 }
 0xec8   :  { %v797_v29 = vmul.f32 %v1429_v8, %v707_v16 }
 0xf2b   :  { %v800_v27 = vpop.permute.xlu0 %799 }
 0xf2c   :  { %v802_v28 = vmul.f32 %v1429_v8, %v800_v27 }
 0xf2e   :  { %804 = vrot.lane.b32.xlu1 %v802_v28, %s1549_s26 }
 0xfa0   :  { %v805_v12 = vpop.permute.xlu1 %804 }
 0xfa1   :  { %v807_v30 = vadd.f32 %v805_v12, %v797_v29 }
 0xfa3   :  { %1430 = vtanh.f32 %v807_v30 }
 0xfad   :  { %v1431_v48 = vpop.eup %1430 }
 0xfae   :  { %810 = vrot.lane.b32.xlu0 %v1431_v48, %s1548_s4 }
0x1020   :  { %v811_v31 = vpop.permute.xlu0 %810 }
0x1021   :  { %v813_v32 = vmul.f32 %v1429_v8, %v811_v31 }
0x1023   :  { %815 = vrot.lane.b32.xlu1 %v813_v32, %s1549_s26 }
0x1095   :  { %v816_v33 = vpop.permute.xlu1 %815 }
0x1096   :  { %1290 = vmatmul.mubr.msk.f32.vlgmr.msra.gmra.mrb[6].mxu1 %vm215_vm3, %v816_v33 }
0x1097   :  { %1311 = vmatprep.mubr.msk.f32.mxu1 %vm1546_vm0, %v1547_v1 }
0x1169   :  { %v885_v34 = vpop.f32.mrb[6].mxu1 }
0x116a   :  { %v889_v35 = vadd.f32 %v885_v34, %v1669_v53  ;;  %v1291_v36 = vpop.f32.mrb[7].mxu1 }
0x116c   :  { %1432 = vtanh.f32 %v889_v35  ;;  %v1155_v38 = vmul.f32 -1.442695, %v889_v35 }
0x116e   :  { %1434 = vpow2.f32 %v1155_v38 }
0x1176   :  { %v1433_v37 = vpop.eup %1432 }
0x1177   :  { %899 = vrot.lane.b32.xlu0 %v1433_v37, %s1548_s4 }
0x1178   :  { %v1435_v39 = vpop.eup %1434 }
0x1179   :  { %v893_v40 = vadd.f32 1.0, %v1435_v39 }
0x117b   :  { %1436 = vrcp.f32 %v893_v40 }
0x1185   :  { %v1437_v41 = vpop.eup %1436 }
0x1186   :  { %v897_v44 = vmul.f32 %v1437_v41, %v807_v30 }
0x11e9   :  { %v900_v42 = vpop.permute.xlu0 %899 }
0x11ea   :  { %v902_v43 = vmul.f32 %v1437_v41, %v900_v42 }
0x11ec   :  { %904 = vrot.lane.b32.xlu1 %v902_v43, %s1549_s26 }
0x125e   :  { %v905_v1 = vpop.permute.xlu1 %904 }
0x125f   :  { %v907_v46 = vadd.f32 %v905_v1, %v897_v44 }
0x1261   :  { %1438 = vtanh.f32 %v907_v46 }
0x126b   :  { %v1439_v53 = vpop.eup %1438 }
0x126c   :  { %910 = vrot.lane.b32.xlu0 %v1439_v53, %s1548_s4 }
0x12de   :  { %v911_v49 = vpop.permute.xlu0 %910 }
0x12df   :  { %v913_v50 = vmul.f32 %v1437_v41, %v911_v49 }
0x12e1   :  { %915 = vrot.lane.b32.xlu1 %v913_v50, %s1549_s26 }
0x1353   :  { %v916_v51 = vpop.permute.xlu1 %915 }
0x1354   :  { %1301 = vmatmul.mubr.msk.f32.vlgmr.msra.gmra.mrb[8].mxu0 %vm215_vm3, %v916_v51 }
0x1427   :  { %v985_v52 = vpop.f32.mrb[8].mxu0 }
0x1428   :  { %v989_v55 = vadd.f32 %v985_v52, %v1672_v54  ;;  %v1302_v56 = vpop.f32.mrb[9].mxu0  ;;  %v136_v54 = vld [vmem:[%s1817_s3] sm:$0xff]  ;;  %s1551_s3 = smov [#allocation6]  }
0x1429   :  { %v1367_v6 = vpack.c.bf16 %v137_v4, %v136_v54  ;;  %s1114_s13 = sshll.u32 %s1551_s3, 4  ;;  %s1115_s13 = int_to_ptr.vmem [resolvable:$true] %s1114_s13 }
0x142a   :  { %1440 = vtanh.f32 %v989_v55  ;;  %v1157_v58 = vmul.f32 -1.442695, %v989_v55  ;;  %s1470_s1 = scalar_lea.vmem %s1115_s13, 32  ;;  %p1475_p9 = scmp.lt.s32.totalorder %s1115_s13, %s1115_s13 }
0x142b   :  { %1368 = vmatpush3.bf16.msra.mxu1 %v1367_v6  ;;  %p1471_p8 = scmp.ne.s32.totalorder %s1115_s13, %s1470_s1  ;;  %p1476_p10 = scmp.lt.s32.totalorder %s1470_s1, %s1470_s1 }
0x142c   :  { %1442 = vpow2.f32 %v1157_v58  ;;  %1369 = vmatprep.subr.bf16.mxu1 %v1545_v0 }
0x142d   :  { %p1477_p11 = por %p1476_p10, %p1475_p9 }
0x142f   :  { %1371 = vmatpush3.bf16.msra.mxu1 %v1370_v9  ;;  %p1478_p12 = pnand %p1477_p11, %p1471_p8 }
0x1434   :  { %v1441_v57 = vpop.eup %1440 }
0x1435   :  { %999 = vrot.lane.b32.xlu0 %v1441_v57, %s1548_s4 }
0x1436   :  { %v1443_v59 = vpop.eup %1442 }
0x1437   :  { %v993_v60 = vadd.f32 1.0, %v1443_v59 }
0x1439   :  { %1444 = vrcp.f32 %v993_v60 }
0x1443   :  { %v1445_v45 = vpop.eup %1444 }
0x1444   :  { %v997_v63 = vmul.f32 %v1445_v45, %v907_v46 }
0x14a7   :  { %v1000_v61 = vpop.permute.xlu0 %999 }
0x14a8   :  { %v1002_v62 = vmul.f32 %v1445_v45, %v1000_v61 }
0x14aa   :  { %1004 = vrot.lane.b32.xlu1 %v1002_v62, %s1549_s26 }
0x151c   :  { %v1005_v2 = vpop.permute.xlu1 %1004 }
0x151d   :  { %v1007_v3 = vadd.f32 %v1005_v2, %v997_v63 }
0x151f   :  { %1446 = vtanh.f32 %v1007_v3 }
0x1529   :  { %v1447_v10 = vpop.eup %1446 }
0x152a   :  { %1010 = vrot.lane.b32.xlu0 %v1447_v10, %s1548_s4 }
0x152e   :  { %1093 = vrot.lane.b32.xlu0 %v1007_v3, %s1550_s12 }
0x159c   :  { %v1011_v11 = vpop.permute.xlu0 %1010 }
0x159d   :  { %v1013_v13 = vmul.f32 %v1445_v45, %v1011_v11 }
0x159f   :  { %1015 = vrot.lane.b32.xlu1 %v1013_v13, %s1549_s26 }
0x15a0   :  { %v1094_v14 = vpop.permute.xlu0 %1093 }
0x15a1   :  { %1097 = vst.msk [vmem:[#allocation8] sm:$0x3] %vm1096_vm4, %v1094_v14 }
0x1611   :  { %v1016_v15 = vpop.permute.xlu1 %1015 }
0x1612   :  { %1312 = vmatmul.mubr.msk.f32.vlgmr.msra.gmra.mrb[8].mxu1 %vm215_vm3, %v1016_v15 }
0x16e5   :  { %v1085_v0 = vpop.f32.mrb[8].mxu1 }
0x16e6   :  { %v1313_v16 = vpop.f32.mrb[9].mxu1  ;;  %1091 = vst.msk [vmem:[#allocation6] sm:$0x3] %vm1089_vm5, %v1085_v0  ;;  %1090 = vst.msk [vmem:[#allocation5] sm:$0x3] %vm1089_vm5, %v1085_v0 }
0x16e7   :  { %1481 = shalt.err (!%p1478_p12)
}
0x16e8   :  { %s1482_s20 = scalar_lea.hbm %s1820_s6, 32 }
0x16e9   :  { %p1483_p13 = scmp.ne.s32.totalorder %s1820_s6, %s1482_s20  ;;  %p1486_p0 = scmp.lt.u32.totalorder %s1482_s20, %s1820_s6 }
0x16eb   :  { %p1488_p1 = pnand %p1486_p0, %p1483_p13 }
0x16ed   :  { %1491 = shalt.err (!%p1488_p1)
}
0x16ee   :  { %1117 = dma.vmem_to_hbm [thread:$0]  %s1115_s13, 32, %s1820_s6, [#allocation7]  }
0x16ef   :  { %s1492_s2 = scalar_lea.vmem %s1764_s15, 32  ;;  %p1497_p3 = scmp.lt.s32.totalorder %s1764_s15, %s1764_s15 }
0x16f0   :  { %p1493_p2 = scmp.ne.s32.totalorder %s1764_s15, %s1492_s2  ;;  %p1498_p4 = scmp.lt.s32.totalorder %s1492_s2, %s1492_s2 }
0x16f2   :  { %p1499_p5 = por %p1498_p4, %p1497_p3 }
0x16f4   :  { %p1500_p6 = pnand %p1499_p5, %p1493_p2 }
0x16f6   :  { %1503 = shalt.err (!%p1500_p6)
}
0x16f7   :  { %s1504_s27 = scalar_lea.hbm %s1819_s5, 32 }
0x16f8   :  { %p1505_p7 = scmp.ne.s32.totalorder %s1819_s5, %s1504_s27  ;;  %p1508_p8 = scmp.lt.u32.totalorder %s1504_s27, %s1819_s5 }
0x16fa   :  { %p1510_p9 = pnand %p1508_p8, %p1505_p7 }
0x16fc   :  { %1513 = shalt.err (!%p1510_p9)
}
0x16fd   :  { %1107 = dma.vmem_to_hbm [thread:$0]  %s1764_s15, 32, %s1819_s5, [#allocation4]  }
0x16fe   :  { %s1514_s10 = scalar_lea.vmem %s1766_s17, 32  ;;  %p1519_p11 = scmp.lt.s32.totalorder %s1766_s17, %s1766_s17 }
0x16ff   :  { %p1515_p10 = scmp.ne.s32.totalorder %s1766_s17, %s1514_s10  ;;  %p1520_p12 = scmp.lt.s32.totalorder %s1514_s10, %s1514_s10 }
0x1701   :  { %p1521_p13 = por %p1520_p12, %p1519_p11 }
0x1703   :  { %p1522_p0 = pnand %p1521_p13, %p1515_p10 }
0x1705   :  { %1525 = shalt.err (!%p1522_p0)
}
0x1706   :  { %s1526_s3 = scalar_lea.hbm %s1821_s7, 32 }
0x1707   :  { %p1527_p1 = scmp.ne.s32.totalorder %s1821_s7, %s1526_s3  ;;  %p1530_p2 = scmp.lt.u32.totalorder %s1526_s3, %s1821_s7 }
0x1709   :  { %p1532_p3 = pnand %p1530_p2, %p1527_p1 }
0x170b   :  { %1535 = shalt.err (!%p1532_p3)
}
0x170c   :  { %1127 = dma.vmem_to_hbm [thread:$0]  %s1766_s17, 32, %s1821_s7, [#allocation7]  }
0x170d   :  { %1538 = dma.done.wait [#allocation4], 32  }
0x170e   :  { %1539 = vsyncadd [#allocation4], 4294967264 }
0x170f   :  { %1540 = dma.done.wait [#allocation7], 64  }
0x1710   :  { %1541 = vsyncadd [#allocation7], 4294967232 }
0x1711   :  { %1137 = vsyncpa [#allocation3], 1 }
0x1712   :  { %1138 = vsyncpa [#allocation4], 1 }
0x1713   :  { %1139 = vsyncpa [#allocation7], 1 }

</bundles_post_ra>
